<compile_context>
chip_gen: v7x
topology: tpu7x:2x2x1
jax: 0.10.0
libtpu: 0.0.40
codegen_flags: <defaults>
</compile_context>

<pallas_src>
import functools

import jax
import jax.numpy as jnp
from jax import lax
from jax.experimental import pallas as pl
from jax.experimental.pallas import tpu as pltpu


_DOT_LAST = (((1,), (1,)), ((), ()))  # contract last (lane) dim of both operands


def _nst_kernel(fs_ref, ft_ref, out_ref, acc_ss, acc_tt, acc_st, *,
                s_total, tk, ragged):
    k = pl.program_id(1)

    @pl.when(k == 0)
    def _():
        acc_ss[...] = jnp.zeros_like(acc_ss)
        acc_tt[...] = jnp.zeros_like(acc_tt)
        acc_st[...] = jnp.zeros_like(acc_st)

    fs = fs_ref[...]  # (C, tk), native dtype (bf16 goes straight to the MXU)
    ft = ft_ref[...]  # (C, tk)

    if ragged:
        # The final S tile is a partial block: Pallas leaves the out-of-bounds
        # lanes unspecified, so zero them before they reach the MXU.  This
        # replaces the wrapper-side jnp.pad (a full HBM round-trip) of the
        # previous version.  Zeroed lanes are exactly loss-neutral for the
        # Gram accumulation and the norms.
        lane = lax.broadcasted_iota(jnp.int32, fs.shape, 1)
        valid = lane < (s_total - k * tk)
        fs = jnp.where(valid, fs, jnp.zeros_like(fs))
        ft = jnp.where(valid, ft, jnp.zeros_like(ft))

    # Raw (un-normalized) Gram partials on the MXU, f32 accumulation.
    acc_ss[...] += lax.dot_general(fs, fs, _DOT_LAST,
                                   preferred_element_type=jnp.float32)
    acc_tt[...] += lax.dot_general(ft, ft, _DOT_LAST,
                                   preferred_element_type=jnp.float32)
    acc_st[...] += lax.dot_general(ft, fs, _DOT_LAST,
                                   preferred_element_type=jnp.float32)

    @pl.when(k == pl.num_programs(1) - 1)
    def _():
        g_ss = acc_ss[...]
        g_tt = acc_tt[...]
        g_st = acc_st[...]
        C = g_ss.shape[0]

        # Squared row norms live on the Gram diagonals; pull them out with an
        # iota mask (no gathers).  Row- and column-layout copies avoid any
        # (C,1) <-> (1,C) transpose.
        rows = lax.broadcasted_iota(jnp.int32, (C, C), 0)
        cols = lax.broadcasted_iota(jnp.int32, (C, C), 1)
        diag = rows == cols
        ss_sq_col = jnp.sum(jnp.where(diag, g_ss, 0.0), axis=1, keepdims=True)
        ss_sq_row = jnp.sum(jnp.where(diag, g_ss, 0.0), axis=0, keepdims=True)
        tt_sq_col = jnp.sum(jnp.where(diag, g_tt, 0.0), axis=1, keepdims=True)
        tt_sq_row = jnp.sum(jnp.where(diag, g_tt, 0.0), axis=0, keepdims=True)

        # PyTorch F.normalize: x / max(||x||, eps) == x * rsqrt(max(||x||^2, eps^2))
        eps2 = jnp.float32(1e-24)
        inv_s_col = lax.rsqrt(jnp.maximum(ss_sq_col, eps2))  # (C, 1)
        inv_s_row = lax.rsqrt(jnp.maximum(ss_sq_row, eps2))  # (1, C)
        inv_t_col = lax.rsqrt(jnp.maximum(tt_sq_col, eps2))  # (C, 1)
        inv_t_row = lax.rsqrt(jnp.maximum(tt_sq_row, eps2))  # (1, C)

        n_ss = g_ss * inv_s_col * inv_s_row
        n_tt = g_tt * inv_t_col * inv_t_row
        n_st = g_st * inv_t_col * inv_s_row  # rows ~ teacher, cols ~ student

        # Single fused elementwise combine + one cross-lane reduce.
        contrib = jnp.sum(n_tt * n_tt + n_ss * n_ss - 2.0 * n_st * n_st)
        out_ref[...] = jnp.full(out_ref.shape, contrib, dtype=out_ref.dtype)


def _choose_s_tile(S, C, itemsize, max_tile):
    """Return (tk, K, ragged) for the spatial axis.

    tk: S-tile width; K: number of tiles; ragged: last tile is partial.
    2 inputs x 2 pipeline buffers of (C, tk) must fit comfortably inside the
    default scoped-VMEM budget on every chip generation.
    """
    lane = 128
    budget = 6 * 1024 * 1024
    units = max(1, budget // (4 * C * itemsize * lane))
    units = min(units, 8192 // lane)          # hard cap on tile width
    tk_cap = units * lane
    if max_tile is not None:                  # (testing hook)
        tk_cap = min(tk_cap, max(lane, (max_tile // lane) * lane))
    if S <= tk_cap:
        return S, 1, False                    # one block == full array dim
    tk = tk_cap
    return tk, pl.cdiv(S, tk), (S % tk) != 0


@functools.partial(jax.jit, static_argnames=("max_tile",))
def nst_loss(fm_s, fm_t, max_tile=None):
    """NST distillation loss.  fm_s, fm_t: (B, C, H, W) feature maps."""
    assert fm_s.shape == fm_t.shape, (fm_s.shape, fm_t.shape)
    B, C, H, W = fm_s.shape
    S = H * W

    fs = fm_s.reshape(B, C, S)   # contiguous reshape: no copy
    ft = fm_t.reshape(B, C, S)

    itemsize = jnp.dtype(fm_s.dtype).itemsize
    tk, K, ragged = _choose_s_tile(S, C, itemsize, max_tile)

    kernel = functools.partial(_nst_kernel, s_total=S, tk=tk, ragged=ragged)

    out = pl.pallas_call(
        kernel,
        out_shape=jax.ShapeDtypeStruct((B, 1, 128), jnp.float32),
        grid_spec=pltpu.PrefetchScalarGridSpec(
            num_scalar_prefetch=0,
            grid=(B, K),
            in_specs=[
                pl.BlockSpec((pl.Squeezed(), C, tk), lambda b, k: (b, 0, k)),
                pl.BlockSpec((pl.Squeezed(), C, tk), lambda b, k: (b, 0, k)),
            ],
            out_specs=pl.BlockSpec((pl.Squeezed(), 1, 128),
                                   lambda b, k: (b, 0, 0)),
            scratch_shapes=[
                pltpu.VMEM((C, C), jnp.float32),  # acc_ss
                pltpu.VMEM((C, C), jnp.float32),  # acc_tt
                pltpu.VMEM((C, C), jnp.float32),  # acc_st
            ],
        ),
        compiler_params=pltpu.CompilerParams(
            dimension_semantics=("parallel", "arbitrary"),
        ),
    )(fs, ft)

    # Each of the three poly-kernel terms is a mean over (B, C, C).
    return jnp.sum(out[:, 0, 0]) / jnp.float32(B * C * C)


def _nst_ref(fm_s, fm_t):
    # Pure-JAX reference of the PyTorch forward (for sanity checking).
    B, C, H, W = fm_s.shape
    eps = 1e-12
    fs = fm_s.reshape(B, C, -1).astype(jnp.float32)
    ft = fm_t.reshape(B, C, -1).astype(jnp.float32)
    fs = fs / jnp.maximum(jnp.linalg.norm(fs, axis=2, keepdims=True), eps)
    ft = ft / jnp.maximum(jnp.linalg.norm(ft, axis=2, keepdims=True), eps)

    def poly(a, b):
        g = jnp.einsum("bis,bjs->bij", a, b)
        return g ** 2

    return (poly(ft, ft).mean() + poly(fs, fs).mean()
            - 2.0 * poly(fs, ft).mean())


if __name__ == "__main__":
    key = jax.random.PRNGKey(0)
    k1, k2, k3, k4, k5, k6 = jax.random.split(key, 6)

    # Case 1: lane-aligned spatial size (S = 256), f32, single S tile.
    B, C, H, W = 2, 4, 16, 16
    fm_s = jax.random.normal(k1, (B, C, H, W), dtype=jnp.float32)
    fm_t = jax.random.normal(k2, (B, C, H, W), dtype=jnp.float32)
    loss = nst_loss(fm_s, fm_t)
    jax.block_until_ready(loss)
    ref = _nst_ref(fm_s, fm_t)
    assert jnp.allclose(loss, ref, rtol=1e-5, atol=1e-6), (loss, ref)

    # Case 2: non-128-multiple spatial size (S = 49, single full-width block,
    # no padding) with bf16 inputs fed straight into the MXU.
    B2, C2, H2, W2 = 2, 8, 7, 7
    fm_s2 = jax.random.normal(k3, (B2, C2, H2, W2), dtype=jnp.float32)
    fm_t2 = jax.random.normal(k4, (B2, C2, H2, W2), dtype=jnp.float32)
    loss2 = nst_loss(fm_s2.astype(jnp.bfloat16), fm_t2.astype(jnp.bfloat16))
    jax.block_until_ready(loss2)
    ref2 = _nst_ref(fm_s2.astype(jnp.bfloat16), fm_t2.astype(jnp.bfloat16))
    assert jnp.allclose(loss2, ref2, rtol=5e-2, atol=1e-3), (loss2, ref2)

    # Case 3: multi-tile ragged path (S = 289, forced tk = 128 -> K = 3 with a
    # partial, mask-handled last tile).  Exercises the pad-free masking path.
    B3, C3, H3, W3 = 2, 4, 17, 17
    fm_s3 = jax.random.normal(k5, (B3, C3, H3, W3), dtype=jnp.float32)
    fm_t3 = jax.random.normal(k6, (B3, C3, H3, W3), dtype=jnp.float32)
    loss3 = nst_loss(fm_s3, fm_t3, max_tile=128)
    jax.block_until_ready(loss3)
    ref3 = _nst_ref(fm_s3, fm_t3)
    assert jnp.allclose(loss3, ref3, rtol=1e-5, atol=1e-5), (loss3, ref3)

    print("KERNEL_OK")
</pallas_src>

<mosaic_0001>
module attributes {stable_mosaic.version = 11 : i64} {
  func.func @_nst_kernel(%arg0: i32, %arg1: i32, %arg2: memref<1x4x256xf32, #tpu.memory_space<vmem>>, %arg3: memref<1x4x256xf32, #tpu.memory_space<vmem>>, %arg4: memref<1x1x128xf32, #tpu.memory_space<vmem>>, %arg5: memref<4x4xf32, #tpu.memory_space<vmem>>, %arg6: memref<4x4xf32, #tpu.memory_space<vmem>>, %arg7: memref<4x4xf32, #tpu.memory_space<vmem>>) attributes {dimension_semantics = [#tpu.dimension_semantics<parallel>, #tpu.dimension_semantics<arbitrary>], iteration_bounds = array<i64: 2, 1>, scalar_prefetch = 0 : i64, scratch_operands = 3 : i64, tpu.core_type = #tpu.core_type<tc>, window_params = [{transform_indices = @transform_0, window_bounds = array<i64: 1, 4, 256>}, {transform_indices = @transform_1, window_bounds = array<i64: 1, 4, 256>}, {transform_indices = @transform_2, window_bounds = array<i64: 1, 1, 128>}]} {
    %c0_i32 = arith.constant 0 : i32
    %0 = arith.cmpi eq, %arg1, %c0_i32 : i32
    %1 = arith.extui %0 : i1 to i32
    %c0_i32_0 = arith.constant 0 : i32
    %2 = arith.cmpi ne, %1, %c0_i32_0 : i32
    scf.if %2 {
      %cst_22 = arith.constant 0.000000e+00 : f32
      %22 = vector.broadcast %cst_22 : f32 to vector<4x4xf32>
      %c0_23 = arith.constant 0 : index
      %c0_24 = arith.constant 0 : index
      %23 = vector.load %arg5[%c0_23, %c0_24] : memref<4x4xf32, #tpu.memory_space<vmem>>, vector<4x4xf32>
      tpu.vector_store %arg5[%c0_23, %c0_24], %22 {strides = array<i32>} : memref<4x4xf32, #tpu.memory_space<vmem>>, vector<4x4xf32>,
      %cst_25 = arith.constant 0.000000e+00 : f32
      %24 = vector.broadcast %cst_25 : f32 to vector<4x4xf32>
      %c0_26 = arith.constant 0 : index
      %c0_27 = arith.constant 0 : index
      %25 = vector.load %arg6[%c0_26, %c0_27] : memref<4x4xf32, #tpu.memory_space<vmem>>, vector<4x4xf32>
      tpu.vector_store %arg6[%c0_26, %c0_27], %24 {strides = array<i32>} : memref<4x4xf32, #tpu.memory_space<vmem>>, vector<4x4xf32>,
      %cst_28 = arith.constant 0.000000e+00 : f32
      %26 = vector.broadcast %cst_28 : f32 to vector<4x4xf32>
      %c0_29 = arith.constant 0 : index
      %c0_30 = arith.constant 0 : index
      %27 = vector.load %arg7[%c0_29, %c0_30] : memref<4x4xf32, #tpu.memory_space<vmem>>, vector<4x4xf32>
      tpu.vector_store %arg7[%c0_29, %c0_30], %26 {strides = array<i32>} : memref<4x4xf32, #tpu.memory_space<vmem>>, vector<4x4xf32>,
    } else {
    }
    %c0 = arith.constant 0 : index
    %c0_1 = arith.constant 0 : index
    %c0_2 = arith.constant 0 : index
    %3 = vector.load %arg2[%c0, %c0_1, %c0_2] : memref<1x4x256xf32, #tpu.memory_space<vmem>>, vector<1x4x256xf32>
    %4 = vector.shape_cast %3 : vector<1x4x256xf32> to vector<4x256xf32>
    %c0_3 = arith.constant 0 : index
    %c0_4 = arith.constant 0 : index
    %c0_5 = arith.constant 0 : index
    %5 = vector.load %arg3[%c0_3, %c0_4, %c0_5] : memref<1x4x256xf32, #tpu.memory_space<vmem>>, vector<1x4x256xf32>
    %6 = vector.shape_cast %5 : vector<1x4x256xf32> to vector<4x256xf32>
    %c0_6 = arith.constant 0 : index
    %c0_7 = arith.constant 0 : index
    %7 = vector.load %arg5[%c0_6, %c0_7] : memref<4x4xf32, #tpu.memory_space<vmem>>, vector<4x4xf32>
    %cst = arith.constant dense<0.000000e+00> : vector<4x4xf32>
    %8 = tpu.matmul %4, %4, %cst {dimension_numbers = #tpu.dot_dimension_numbers<[1], [1], [0], [0], [0, 0, 1, 0], [], []>} : vector<4x256xf32>, vector<4x256xf32>, vector<4x4xf32> -> vector<4x4xf32>
    %9 = arith.addf %7, %8 : vector<4x4xf32>
    %c0_8 = arith.constant 0 : index
    %c0_9 = arith.constant 0 : index
    %10 = vector.load %arg5[%c0_8, %c0_9] : memref<4x4xf32, #tpu.memory_space<vmem>>, vector<4x4xf32>
    tpu.vector_store %arg5[%c0_8, %c0_9], %9 {strides = array<i32>} : memref<4x4xf32, #tpu.memory_space<vmem>>, vector<4x4xf32>,
    %c0_10 = arith.constant 0 : index
    %c0_11 = arith.constant 0 : index
    %11 = vector.load %arg6[%c0_10, %c0_11] : memref<4x4xf32, #tpu.memory_space<vmem>>, vector<4x4xf32>
    %cst_12 = arith.constant dense<0.000000e+00> : vector<4x4xf32>
    %12 = tpu.matmul %6, %6, %cst_12 {dimension_numbers = #tpu.dot_dimension_numbers<[1], [1], [0], [0], [0, 0, 1, 0], [], []>} : vector<4x256xf32>, vector<4x256xf32>, vector<4x4xf32> -> vector<4x4xf32>
    %13 = arith.addf %11, %12 : vector<4x4xf32>
    %c0_13 = arith.constant 0 : index
    %c0_14 = arith.constant 0 : index
    %14 = vector.load %arg6[%c0_13, %c0_14] : memref<4x4xf32, #tpu.memory_space<vmem>>, vector<4x4xf32>
    tpu.vector_store %arg6[%c0_13, %c0_14], %13 {strides = array<i32>} : memref<4x4xf32, #tpu.memory_space<vmem>>, vector<4x4xf32>,
    %c0_15 = arith.constant 0 : index
    %c0_16 = arith.constant 0 : index
    %15 = vector.load %arg7[%c0_15, %c0_16] : memref<4x4xf32, #tpu.memory_space<vmem>>, vector<4x4xf32>
    %cst_17 = arith.constant dense<0.000000e+00> : vector<4x4xf32>
    %16 = tpu.matmul %6, %4, %cst_17 {dimension_numbers = #tpu.dot_dimension_numbers<[1], [1], [0], [0], [0, 0, 1, 0], [], []>} : vector<4x256xf32>, vector<4x256xf32>, vector<4x4xf32> -> vector<4x4xf32>
    %17 = arith.addf %15, %16 : vector<4x4xf32>
    %c0_18 = arith.constant 0 : index
    %c0_19 = arith.constant 0 : index
    %18 = vector.load %arg7[%c0_18, %c0_19] : memref<4x4xf32, #tpu.memory_space<vmem>>, vector<4x4xf32>
    tpu.vector_store %arg7[%c0_18, %c0_19], %17 {strides = array<i32>} : memref<4x4xf32, #tpu.memory_space<vmem>>, vector<4x4xf32>,
    %c0_i32_20 = arith.constant 0 : i32
    %19 = arith.cmpi eq, %arg1, %c0_i32_20 : i32
    %20 = arith.extui %19 : i1 to i32
    %c0_i32_21 = arith.constant 0 : i32
    %21 = arith.cmpi ne, %20, %c0_i32_21 : i32
    scf.if %21 {
      %c0_22 = arith.constant 0 : index
      %c0_23 = arith.constant 0 : index
      %22 = vector.load %arg5[%c0_22, %c0_23] : memref<4x4xf32, #tpu.memory_space<vmem>>, vector<4x4xf32>
      %c0_24 = arith.constant 0 : index
      %c0_25 = arith.constant 0 : index
      %23 = vector.load %arg6[%c0_24, %c0_25] : memref<4x4xf32, #tpu.memory_space<vmem>>, vector<4x4xf32>
      %c0_26 = arith.constant 0 : index
      %c0_27 = arith.constant 0 : index
      %24 = vector.load %arg7[%c0_26, %c0_27] : memref<4x4xf32, #tpu.memory_space<vmem>>, vector<4x4xf32>
      %25 = tpu.iota {dimensions = array<i32: 0>} : vector<4x4xi32>
      %26 = tpu.iota {dimensions = array<i32: 1>} : vector<4x4xi32>
      %27 = arith.cmpi eq, %25, %26 : vector<4x4xi32>
      %cst_28 = arith.constant 0.000000e+00 : f32
      %28 = vector.broadcast %cst_28 : f32 to vector<4x4xf32>
      %29 = arith.select %27, %22, %28 : vector<4x4xi1>, vector<4x4xf32>
      %cst_29 = arith.constant dense<0.000000e+00> : vector<4xf32>
      %30 = vector.multi_reduction <add>, %29, %cst_29 [1] : vector<4x4xf32> to vector<4xf32>
      %31 = vector.shape_cast %30 : vector<4xf32> to vector<4x1xf32>
      %cst_30 = arith.constant 0.000000e+00 : f32
      %32 = vector.broadcast %cst_30 : f32 to vector<4x4xf32>
      %33 = arith.select %27, %22, %32 : vector<4x4xi1>, vector<4x4xf32>
      %cst_31 = arith.constant dense<0.000000e+00> : vector<4xf32>
      %34 = vector.multi_reduction <add>, %33, %cst_31 [0] : vector<4x4xf32> to vector<4xf32>
      %35 = vector.shape_cast %34 : vector<4xf32> to vector<1x4xf32>
      %cst_32 = arith.constant 0.000000e+00 : f32
      %36 = vector.broadcast %cst_32 : f32 to vector<4x4xf32>
      %37 = arith.select %27, %23, %36 : vector<4x4xi1>, vector<4x4xf32>
      %cst_33 = arith.constant dense<0.000000e+00> : vector<4xf32>
      %38 = vector.multi_reduction <add>, %37, %cst_33 [1] : vector<4x4xf32> to vector<4xf32>
      %39 = vector.shape_cast %38 : vector<4xf32> to vector<4x1xf32>
      %cst_34 = arith.constant 0.000000e+00 : f32
      %40 = vector.broadcast %cst_34 : f32 to vector<4x4xf32>
      %41 = arith.select %27, %23, %40 : vector<4x4xi1>, vector<4x4xf32>
      %cst_35 = arith.constant dense<0.000000e+00> : vector<4xf32>
      %42 = vector.multi_reduction <add>, %41, %cst_35 [0] : vector<4x4xf32> to vector<4xf32>
      %43 = vector.shape_cast %42 : vector<4xf32> to vector<1x4xf32>
      %cst_36 = arith.constant 1.000000e-24 : f32
      %44 = vector.broadcast %cst_36 : f32 to vector<4x1xf32>
      %45 = arith.maximumf %31, %44 : vector<4x1xf32>
      %46 = math.rsqrt %45 : vector<4x1xf32>
      %cst_37 = arith.constant 1.000000e-24 : f32
      %47 = vector.broadcast %cst_37 : f32 to vector<1x4xf32>
      %48 = arith.maximumf %35, %47 : vector<1x4xf32>
      %49 = math.rsqrt %48 : vector<1x4xf32>
      %cst_38 = arith.constant 1.000000e-24 : f32
      %50 = vector.broadcast %cst_38 : f32 to vector<4x1xf32>
      %51 = arith.maximumf %39, %50 : vector<4x1xf32>
      %52 = math.rsqrt %51 : vector<4x1xf32>
      %cst_39 = arith.constant 1.000000e-24 : f32
      %53 = vector.broadcast %cst_39 : f32 to vector<1x4xf32>
      %54 = arith.maximumf %43, %53 : vector<1x4xf32>
      %55 = math.rsqrt %54 : vector<1x4xf32>
      %56 = vector.broadcast %46 : vector<4x1xf32> to vector<4x4xf32>
      %57 = arith.mulf %22, %56 : vector<4x4xf32>
      %58 = vector.broadcast %49 : vector<1x4xf32> to vector<4x4xf32>
      %59 = arith.mulf %57, %58 : vector<4x4xf32>
      %60 = vector.broadcast %52 : vector<4x1xf32> to vector<4x4xf32>
      %61 = arith.mulf %23, %60 : vector<4x4xf32>
      %62 = vector.broadcast %55 : vector<1x4xf32> to vector<4x4xf32>
      %63 = arith.mulf %61, %62 : vector<4x4xf32>
      %64 = vector.broadcast %52 : vector<4x1xf32> to vector<4x4xf32>
      %65 = arith.mulf %24, %64 : vector<4x4xf32>
      %66 = vector.broadcast %49 : vector<1x4xf32> to vector<4x4xf32>
      %67 = arith.mulf %65, %66 : vector<4x4xf32>
      %68 = arith.mulf %63, %63 : vector<4x4xf32>
      %69 = arith.mulf %59, %59 : vector<4x4xf32>
      %70 = arith.addf %68, %69 : vector<4x4xf32>
      %cst_40 = arith.constant 2.000000e+00 : f32
      %71 = vector.broadcast %cst_40 : f32 to vector<4x4xf32>
      %72 = arith.mulf %71, %67 : vector<4x4xf32>
      %73 = arith.mulf %72, %67 : vector<4x4xf32>
      %74 = arith.subf %70, %73 : vector<4x4xf32>
      %75 = vector.shape_cast %74 : vector<4x4xf32> to vector<1x4x4xf32>
      %cst_41 = arith.constant dense<0.000000e+00> : vector<1xf32>
      %76 = vector.multi_reduction <add>, %75, %cst_41 [1, 2] : vector<1x4x4xf32> to vector<1xf32>
      %77 = vector.shape_cast %76 : vector<1xf32> to vector<1x1x1xf32>
      %78 = vector.extract %77[0, 0, 0] : f32 from vector<1x1x1xf32>
      %79 = vector.broadcast %78 : f32 to vector<1x128xf32>
      %c0_42 = arith.constant 0 : index
      %c0_43 = arith.constant 0 : index
      %c0_44 = arith.constant 0 : index
      %80 = vector.load %arg4[%c0_42, %c0_43, %c0_44] : memref<1x1x128xf32, #tpu.memory_space<vmem>>, vector<1x1x128xf32>
      %81 = vector.shape_cast %80 : vector<1x1x128xf32> to vector<1x128xf32>
      %82 = vector.shape_cast %79 : vector<1x128xf32> to vector<1x1x128xf32>
      tpu.vector_store %arg4[%c0_42, %c0_43, %c0_44], %82 {strides = array<i32>} : memref<1x1x128xf32, #tpu.memory_space<vmem>>, vector<1x1x128xf32>,
    } else {
    }
    return
  }
  func.func @transform_0(%arg0: i32, %arg1: i32) -> (i32, i32, i32) {
    %c0_i32 = arith.constant 0 : i32
    %c0_i32_0 = arith.constant 0 : i32
    return %arg0, %c0_i32, %arg1 : i32, i32, i32
  }
  func.func @transform_1(%arg0: i32, %arg1: i32) -> (i32, i32, i32) {
    %c0_i32 = arith.constant 0 : i32
    %c0_i32_0 = arith.constant 0 : i32
    return %arg0, %c0_i32, %arg1 : i32, i32, i32
  }
  func.func @transform_2(%arg0: i32, %arg1: i32) -> (i32, i32, i32) {
    %c0_i32 = arith.constant 0 : i32
    %c0_i32_0 = arith.constant 0 : i32
    %c0_i32_1 = arith.constant 0 : i32
    return %arg0, %c0_i32, %c0_i32_0 : i32, i32, i32
  }
}

</mosaic_0001>

<bundles_post_ra>
// kernel: nst_loss.1
= control target key start
LH: loop header
LB: loop body
LE: loop exit
PB: predicated region body
PF: predicated region fallthrough
CT: control target
= control target key end

     0   :  { %s672_s9 = smov 0   ;;  %s674_s10 = smov 0   ;;  %s721_s0 = inlined_call_operand.vmem [shape: f32[2,4,256], index: 0, kind: input, shape index: {}]   ;;  %s722_s1 = inlined_call_operand.vmem [shape: f32[2,4,256], index: 1, kind: input, shape index: {}]   ;;  %s723_s2 = inlined_call_operand.vmem [shape: f32[2,1,128], index: 2, kind: output, shape index: {}]  }
   0x1   :  { %s676_s11 = smov 0  }
   0x2 LB: > { %s24_s12 = sadd.s32 1, %s650_s10  ;;  %p586_p0 = scmp.ge.s32.totalorder %s654_s11, 1  ;;  %s654_s11 = sphi %s676_s11, %s12_s11   ;;  %s650_s10 = sphi %s674_s10, %s725_s10   ;;  %s646_s9 = sphi %s672_s9, %s724_s9  }
   0x3   : > { %p26_p1 = scmp.ge.s32.totalorder %s24_s12, 2  ;;  %p148_p2 = scmp.lt.s32.totalorder %s654_s11, 3 }
   0x5   : > { %s727_s12 = smov (%p26_p1, %s24_s12), 0  ;;  %p149_p3 = pnand %p586_p0, %p148_p2 }
   0x6   : > { %p182_p4 = scmp.lt.s32.totalorder (!%p149_p3), %s646_s9, 1  ;;  %vm208_vm0 = vcmask (!%p149_p3), 27648   ;;  %v656_v0 = vmov (!%p149_p3), 0.0   ;;  %v446_v9 = vlaneseq (!%p149_p3) }
   0x7   : > { %152 = sbr.rel (%p149_p3) target bundleno = 624 (0x270), region = 28  ;;  %209 = vst.msk [vmem:[#allocation2] sm:$0xf] (!%p149_p3), %vm208_vm0, %v656_v0  ;;  %210 = vst.msk [vmem:[#allocation3] sm:$0xf] (!%p149_p3), %vm208_vm0, %v656_v0 }
   0x8   : > { %211 = vst.msk [vmem:[#allocation4] sm:$0xf] (!%p149_p3), %vm208_vm0, %v656_v0  ;;  %v447_v14 = vshrl.u32 (!%p149_p3), %v446_v9, 7  ;;  %v449_v15 = vand.u32 (!%p149_p3), 127, %v446_v9 }
   0xa   : > { %vm450_vm1 = vcmp.eq.s32.totalorder (!%p149_p3), %v447_v14, %v449_v15 }
   0xe   : > { %s729_s9 = smov (!%p182_p4, %s646_s9), 1  ;;  %v214_v5 = vld [vmem:[#allocation2] sm:$0xf]  ;;  %v291_v6 = vld [vmem:[#allocation3] sm:$0xf] }
   0xf   : > { %s593_s13 = sshll.u32 %s729_s9, 3  ;;  %v367_v22 = vld [vmem:[#allocation4] sm:$0xf]  ;;  %s203_s22 = scalar_lea.vmem %s723_s2, %s729_s9 }
  0x10   : > { %s189_s16 = scalar_lea.vmem %s721_s0, %s593_s13  ;;  %s199_s19 = scalar_lea.vmem %s722_s1, %s593_s13 }
  0x11   : > { %v212_v1 = vld [vmem:[%s189_s16] sm:$0xff] }
  0x12   : > { %v213_v2 = vld [vmem:[%s199_s19] sm:$0xff]  ;;  %v216_v3 = vcombine.high %v212_v1, %v212_v1 }
  0x13   : > { %v293_v4 = vcombine.high %v213_v2, %v213_v2 }
  0x14   : > { %218 = vmatprep.subr.mxu0 %v216_v3  ;;  %282 = vmatprep.mubr.f32.mxu0 %v216_v3 }
  0x15   : > { %295 = vmatprep.subr.mxu1 %v293_v4  ;;  %219 = vmatpush1.xpose.msra.mxu0 %v212_v1 }
  0x16   : > { %296 = vmatpush1.xpose.msra.mxu1 %v213_v2  ;;  %359 = vmatprep.mubr.f32.mxu1 %v293_v4 }
  0x17   : > { %368 = vmatprep.subr.mxu0 %v216_v3 }
  0x18   : > { %283 = vmatmul.mubr.f32.vlgmr.msra.gmra.mrb[0].mxu0 %v212_v1 }
  0x19   : > { %360 = vmatmul.mubr.f32.vlgmr.msra.gmra.mrb[0].mxu1 %v213_v2  ;;  %369 = vmatpush1.xpose.msra.mxu0 %v212_v1 }
  0x1a   : > { %432 = vmatprep.mubr.f32.mxu0 %v293_v4 }
  0x1c   : > { %433 = vmatmul.mubr.f32.vlgmr.msra.gmra.mrb[2].mxu0 %v213_v2 }
  0xeb   : > { %v284_v7 = vpop.f32.mrb[0].mxu0 }
  0xec   : > { %v361_v8 = vpop.f32.mrb[0].mxu1  ;;  %v288_v10 = vadd.f32 %v284_v7, %v214_v5  ;;  %v286_v12 = vpop.f32.mrb[1].mxu0 }
  0xed   : > { %v365_v11 = vadd.f32 %v361_v8, %v291_v6  ;;  %v363_v13 = vpop.f32.mrb[1].mxu1 }
  0xee   : > { %290 = vst.msk [vmem:[#allocation2] sm:$0xf] %vm208_vm0, %v288_v10 }
  0xef   : > { %366 = vst.msk [vmem:[#allocation3] sm:$0xf] %vm208_vm0, %v365_v11  ;;  %v434_v23 = vpop.f32.mrb[2].mxu0 }
  0xf0   : > { %v438_v24 = vadd.f32 %v434_v23, %v367_v22  ;;  %v436_v25 = vpop.f32.mrb[3].mxu0 }
  0xf2   : > { %439 = vst.msk [vmem:[#allocation4] sm:$0xf] %vm208_vm0, %v438_v24 }
  0xf5   : > { %v443_v16 = vld [vmem:[#allocation2] sm:$0xf] }
  0xf6   : > { %v444_v17 = vld [vmem:[#allocation3] sm:$0xf]  ;;  %v451_v18 = vsel %vm450_vm1, %v443_v16, 0.0 }
  0xf7   : > { %v452_v19 = vsel %vm208_vm0, %v451_v18, 0.0  ;;  %v461_v20 = vsel %vm450_vm1, %v444_v17, 0.0 }
  0xf8   : > { %453 = vadd.xlane.f32.xlu0 %v452_v19  ;;  %v462_v21 = vsel %vm208_vm0, %v461_v20, 0.0  ;;  %v455_v26 = vrot.slane %v452_v19, 4 }
  0xf9   : > { %v465_v27 = vrot.slane %v462_v21, 4  ;;  %v445_v46 = vld [vmem:[#allocation4] sm:$0xf] }
  0xfa   : > { %v456_v28 = vadd.f32 %v455_v26, %v452_v19 }
  0xfb   : > { %v466_v29 = vadd.f32 %v465_v27, %v462_v21 }
  0xfc   : > { %463 = vadd.xlane.f32.xlu0 %v462_v21  ;;  %v457_v30 = vrot.slane %v456_v28, 2 }
  0xfd   : > { %v467_v31 = vrot.slane %v466_v29, 2 }
  0xfe   : > { %v458_v32 = vadd.f32 %v457_v30, %v456_v28 }
  0xff   : > { %v468_v33 = vadd.f32 %v467_v31, %v466_v29 }
 0x100   : > { %v459_v34 = vrot.slane %v458_v32, 1 }
 0x101   : > { %v469_v35 = vrot.slane %v468_v33, 1 }
 0x102   : > { %v460_v36 = vadd.f32 %v459_v34, %v458_v32 }
 0x103   : > { %v470_v38 = vadd.f32 %v469_v35, %v468_v33 }
 0x104   : > { %v473_v40 = vmax.f32 %v460_v36, 1e-24 }
 0x105   : > { %v477_v42 = vmax.f32 %v470_v38, 1e-24 }
 0x185   : > { %v454_v37 = vpop.xlane.xlu0 %453 }
 0x186   : > { %v471_v39 = vmax.f32 %v454_v37, 1e-24 }
 0x188   : > { %624 = vrsqrt.f32 %v471_v39 }
 0x189   : > { %v464_v41 = vpop.xlane.xlu0 %463  ;;  %626 = vrsqrt.f32 %v473_v40 }
 0x18a   : > { %v475_v43 = vmax.f32 %v464_v41, 1e-24 }
 0x18c   : > { %628 = vrsqrt.f32 %v475_v43 }
 0x18d   : > { %630 = vrsqrt.f32 %v477_v42 }
 0x192   : > { %v625_v44 = vpop.eup %624 }
 0x193   : > { %v479_v45 = vmul.f32 %v625_v44, %v443_v16  ;;  %v627_v47 = vpop.eup %626 }
 0x195   : > { %v480_v49 = vmul.f32 %v627_v47, %v479_v45 }
 0x196   : > { %v629_v48 = vpop.eup %628 }
 0x197   : > { %v481_v50 = vmul.f32 %v629_v48, %v444_v17  ;;  %v483_v51 = vmul.f32 %v629_v48, %v445_v46  ;;  %v631_v52 = vpop.eup %630  ;;  %v486_v56 = vmul.f32 %v480_v49, %v480_v49 }
 0x199   : > { %v482_v53 = vmul.f32 %v631_v52, %v481_v50  ;;  %v484_v54 = vmul.f32 %v627_v47, %v483_v51 }
 0x19b   : > { %v485_v55 = vmul.f32 %v482_v53, %v482_v53  ;;  %v488_v57 = vmul.f32 2.0, %v484_v54 }
 0x19d   : > { %v487_v58 = vadd.f32 %v486_v56, %v485_v55  ;;  %v489_v59 = vmul.f32 %v488_v57, %v484_v54 }
 0x19f   : > { %v490_v60 = vsub.f32 %v487_v58, %v489_v59 }
 0x1a1   : > { %v491_v61 = vsel %vm208_vm0, %v490_v60, 0.0 }
 0x1a2   : > { %492 = vadd.xlane.f32.xlu1 %v491_v61 }
 0x22f   : > { %v493_v62 = vpop.xlane.xlu1 %492 }
 0x230   : > { %v494_v63 = vrot.slane %v493_v62, 4 }
 0x232   : > { %v495_v0 = vadd.f32 %v494_v63, %v493_v62 }
 0x234   : > { %v496_v1 = vrot.slane %v495_v0, 2 }
 0x236   : > { %v497_v2 = vadd.f32 %v496_v1, %v495_v0 }
 0x238   : > { %v498_v3 = vrot.slane %v497_v2, 1 }
 0x23a   : > { %v499_v4 = vadd.f32 %v498_v3, %v497_v2 }
 0x23c   : > { %595 = vpush %v499_v4 }
 0x26d   : > { %s596_s23 = spop %595 }
 0x26e   : > { %v501_v5 = vstv %s596_s23 }
 0x26f   : > { %502 = vst [vmem:[%s203_s22] sm:$0x1] %v501_v5 }
 0x270 PF: > { %s12_s11 = sadd.s32 1, %s654_s11   ;;  %s724_s9 = smov %s650_s10 }
 0x271   : > { %p9_p5 = scmp.ge.s32.totalorder %s12_s11, 4   ;;  %s725_s10 = smov %s727_s12 }
 0x273   :  { %11 = sbr.rel (!%p9_p5) target bundleno = 2 (0x2), region = 69 }

</bundles_post_ra>
